<compile_context>
chip_gen: v7x
topology: tpu7x:2x2x1
jax: 0.10.0
libtpu: 0.0.40
codegen_flags: <defaults>
</compile_context>

<pallas_src>
import math
from functools import partial

import jax
import jax.numpy as jnp
import numpy as np
from jax.experimental import pallas as pl
from jax.experimental.pallas import tpu as pltpu


_MAX_TILE_B = 512   # cap: (32, TB) f32 live activation stays in the vreg file


# ----------------------------------------------------------------------------
# Fused kernel: run every layer of the curve-blended MLP on one batch tile.
#   x_ref : VMEM (tile_b, in_dim)   f32   (batch on sublanes at the DMA level)
#   p_ref : VMEM (n_rows, lane)     f32   packed [W_i | b_i] slab, resident
#   y_ref : VMEM (tile_b, out_dim)  f32
# Inside the kernel, activations are carried as (features, tile_b) so the
# batch dimension rides on lanes for every matmul / tanh.
# ----------------------------------------------------------------------------
def _fused_curve_mlp_kernel(x_ref, p_ref, y_ref, *, layer_shapes, row_offs):
    x = x_ref[...]                                   # (TB, in_dim)
    n_layers = len(layer_shapes)
    h = None
    for i, (out_f, in_f) in enumerate(layer_shapes):  # static unroll
        r0 = row_offs[i]
        w = p_ref[r0:r0 + out_f, 0:in_f]              # (out_f, in_f)
        b = p_ref[r0:r0 + out_f, in_f:in_f + 1]       # (out_f, 1) -> bcast
        if i == 0:
            # h = W1 @ x^T : contract in_dim of both, batch lands on lanes.
            h = jnp.einsum("oi,bi->ob", w, x,
                           preferred_element_type=jnp.float32) + b
        else:
            h = jnp.dot(w, h, preferred_element_type=jnp.float32) + b
        if i < n_layers - 1:
            h = jnp.tanh(h)                           # EUP
    # (out_dim, TB) -> (TB, out_dim): tiny in-kernel pivot (XLU has slack).
    y_ref[...] = h.T.astype(y_ref.dtype)


# ----------------------------------------------------------------------------
# Bezier coefficient layer (plain JAX, traced inside the jit).
# ----------------------------------------------------------------------------
def bezier_coeffs(t, num_bends):
    n = num_bends - 1
    binom = jnp.asarray([math.comb(n, k) for k in range(num_bends)], jnp.float32)
    ks = jnp.arange(num_bends, dtype=jnp.float32)
    t = jnp.asarray(t, jnp.float32)
    return binom * jnp.power(1.0 - t, n - ks) * jnp.power(t, ks)


# ----------------------------------------------------------------------------
# Single jitted forward: blend -> pack slab -> fused Pallas MLP -> l2.
# params: tuple of (w_stack, b_stack) with
#   w_stack: (num_bends, out_f, in_f)   b_stack: (num_bends, out_f, 1)
# ----------------------------------------------------------------------------
@partial(jax.jit, static_argnames=("num_bends",))
def curve_pinn_forward(params, t, x, *, num_bends):
    coeffs_t = bezier_coeffs(t, num_bends)

    # --- Bezier blend + l2, once per call (weights are a few KB). ---
    blended = []
    l2 = jnp.float32(0.0)
    for w_stack, b_stack in params:
        w_t = jnp.einsum("k,koi->oi", coeffs_t, w_stack)   # (out_f, in_f)
        b_t = jnp.einsum("k,kol->ol", coeffs_t, b_stack)   # (out_f, 1)
        l2 = l2 + jnp.sum(w_t * w_t) + jnp.sum(b_t * b_t)
        blended.append((w_t, b_t))

    layer_shapes = tuple((int(w.shape[0]), int(w.shape[1])) for w, _ in blended)
    in_dim = layer_shapes[0][1]
    out_dim = layer_shapes[-1][0]

    # --- Pack all blended params into one lane-dense, (8,128)-padded slab:
    #     layer i occupies rows [row_offs[i], +out_f), with W in cols [0,in_f)
    #     and b in col in_f (augmented-matrix layout). ---
    row_offs = []
    row = 0
    for out_f, _ in layer_shapes:
        row_offs.append(row)
        row += ((out_f + 7) // 8) * 8
    n_rows = max(row, 8)
    max_in = max(in_f for _, in_f in layer_shapes)
    lane = ((max_in + 1 + 127) // 128) * 128
    slab = jnp.zeros((n_rows, lane), jnp.float32)
    for (w_t, b_t), (out_f, in_f), r0 in zip(blended, layer_shapes, row_offs):
        slab = slab.at[r0:r0 + out_f, 0:in_f].set(w_t)
        slab = slab.at[r0:r0 + out_f, in_f:in_f + 1].set(b_t)

    # --- Adaptive batch tile: amortize the ~0.35us per-step overhead while
    #     keeping the (hidden, TB) activation inside the vreg file. ---
    batch = x.shape[0]
    tile_b = min(((batch + 127) // 128) * 128, _MAX_TILE_B)
    n_blocks = pl.cdiv(batch, tile_b)

    x = x.astype(jnp.float32)

    y = pl.pallas_call(
        partial(_fused_curve_mlp_kernel,
                layer_shapes=layer_shapes, row_offs=tuple(row_offs)),
        out_shape=jax.ShapeDtypeStruct((batch, out_dim), jnp.float32),
        grid=(n_blocks,),
        in_specs=[
            pl.BlockSpec((tile_b, in_dim), lambda i: (i, 0)),   # batch tiles
            pl.BlockSpec(slab.shape, lambda i: (0, 0)),         # resident slab
        ],
        out_specs=pl.BlockSpec((tile_b, out_dim), lambda i: (i, 0)),
        compiler_params=pltpu.CompilerParams(
            dimension_semantics=("parallel",)),   # v7x: shard tiles across TCs
    )(x, slab)

    return y, l2


# ----------------------------------------------------------------------------
# CurveNetPINN wrapper (Bezier curve + LinearCurve MLP).
# ----------------------------------------------------------------------------
class CurveNetPINNPallas:
    def __init__(self, layer_dims, num_bends, key):
        self.num_bends = num_bends
        self.fix_points = [True] + [False] * (num_bends - 2) + [True]
        self.layer_dims = layer_dims
        self.l2 = 0.0
        params = []
        for in_f, out_f in zip(layer_dims[:-1], layer_dims[1:]):
            key, kw, kb = jax.random.split(key, 3)
            scale = 1.0 / math.sqrt(in_f)
            # stored as (num_bends, out_f, in_f): the kernel computes
            # h <- W_t @ h with batch on lanes (no per-layer transposes).
            w = jax.random.uniform(kw, (num_bends, out_f, in_f),
                                   jnp.float32, -scale, scale)
            b = jax.random.uniform(kb, (num_bends, out_f, 1),
                                   jnp.float32, -scale, scale)
            params.append((w, b))
        self.params = tuple(params)

    # TODO(synk): import/export_base_parameters, import_base_buffers,
    # init_linear and weights() are host-side parameter plumbing, not part of
    # the forward pass; they are not translated to the kernel.

    def __call__(self, x, t=None, key=None):
        if t is None:
            t = jax.random.uniform(
                key if key is not None else jax.random.PRNGKey(1), ())
        y, l2 = curve_pinn_forward(self.params, t, x,
                                   num_bends=self.num_bends)
        self.l2 = l2   # concrete array set outside the trace; also returned
        return y, l2


# ----------------------------------------------------------------------------
# Pure-JAX reference for correctness checking.
# ----------------------------------------------------------------------------
def reference_forward(params, x, t, num_bends):
    coeffs = bezier_coeffs(t, num_bends)
    h = x
    l2 = jnp.float32(0.0)
    n_layers = len(params)
    for i, (w, b) in enumerate(params):
        w_t = jnp.einsum("k,koi->oi", coeffs, w)     # (out, in)
        b_t = jnp.einsum("k,kol->ol", coeffs, b)     # (out, 1)
        h = h @ w_t.T + b_t[:, 0]
        if i < n_layers - 1:
            h = jnp.tanh(h)
        l2 = l2 + jnp.sum(w_t ** 2) + jnp.sum(b_t ** 2)
    return h, l2


if __name__ == "__main__":
    key = jax.random.PRNGKey(0)
    kx, kp = jax.random.split(key, 2)

    # PINN-style input: batch of (x, t) collocation points.
    batch, in_dim, hidden, out_dim, num_bends = 200, 2, 32, 1, 3
    x = jax.random.uniform(kx, (batch, in_dim), jnp.float32, -1.0, 1.0)
    t_curve = jnp.float32(0.3)

    model = CurveNetPINNPallas([in_dim, hidden, hidden, out_dim],
                               num_bends, kp)

    out, l2 = model(x, t_curve)
    out = jax.block_until_ready(out)
    l2 = jax.block_until_ready(l2)

    ref_out, ref_l2 = reference_forward(model.params, x, t_curve, num_bends)
    np.testing.assert_allclose(np.asarray(out), np.asarray(ref_out),
                               rtol=1e-5, atol=1e-5)
    np.testing.assert_allclose(float(l2), float(ref_l2), rtol=1e-5, atol=1e-5)

    print("KERNEL_OK")
</pallas_src>

<mosaic_0001>
module attributes {stable_mosaic.version = 11 : i64} {
  func.func @_fused_curve_mlp_kernel(%arg0: i32, %arg1: memref<256x2xf32, #tpu.memory_space<vmem>>, %arg2: memref<72x128xf32, #tpu.memory_space<vmem>>, %arg3: memref<256x1xf32, #tpu.memory_space<vmem>>) attributes {dimension_semantics = [#tpu.dimension_semantics<parallel>], iteration_bounds = array<i64: 1>, scalar_prefetch = 0 : i64, scratch_operands = 0 : i64, tpu.core_type = #tpu.core_type<tc>, window_params = [{transform_indices = @transform_0, window_bounds = array<i64: 256, 2>}, {pipeline_mode = #tpu.pipeline_mode<synchronous>, transform_indices = @transform_1, window_bounds = array<i64: 72, 128>}, {transform_indices = @transform_2, window_bounds = array<i64: 256, 1>}]} {
    %c0 = arith.constant 0 : index
    %c0_0 = arith.constant 0 : index
    %0 = vector.load %arg1[%c0, %c0_0] : memref<256x2xf32, #tpu.memory_space<vmem>>, vector<256x2xf32>
    %c0_1 = arith.constant 0 : index
    %c0_2 = arith.constant 0 : index
    %1 = vector.load %arg2[%c0_1, %c0_2] : memref<72x128xf32, #tpu.memory_space<vmem>>, vector<32x2xf32>
    %c0_3 = arith.constant 0 : index
    %c2 = arith.constant 2 : index
    %2 = vector.load %arg2[%c0_3, %c2] : memref<72x128xf32, #tpu.memory_space<vmem>>, vector<32x1xf32>
    "tpu.trace_start"() <{level = 10 : i32, message = "oi,bi->ob"}> : () -> ()
    %cst = arith.constant dense<0.000000e+00> : vector<32x256xf32>
    %3 = tpu.matmul %1, %0, %cst {dimension_numbers = #tpu.dot_dimension_numbers<[1], [1], [0], [0], [0, 0, 1, 0], [], []>} : vector<32x2xf32>, vector<256x2xf32>, vector<32x256xf32> -> vector<32x256xf32>
    "tpu.trace_stop"() : () -> ()
    %4 = vector.broadcast %2 : vector<32x1xf32> to vector<32x256xf32>
    %5 = arith.addf %3, %4 : vector<32x256xf32>
    %6 = math.tanh %5 : vector<32x256xf32>
    %c32 = arith.constant 32 : index
    %c0_4 = arith.constant 0 : index
    %7 = vector.load %arg2[%c32, %c0_4] : memref<72x128xf32, #tpu.memory_space<vmem>>, vector<32x32xf32>
    %c32_5 = arith.constant 32 : index
    %c32_6 = arith.constant 32 : index
    %8 = vector.load %arg2[%c32_5, %c32_6] : memref<72x128xf32, #tpu.memory_space<vmem>>, vector<32x1xf32>
    %cst_7 = arith.constant dense<0.000000e+00> : vector<32x256xf32>
    %9 = tpu.matmul %7, %6, %cst_7 {dimension_numbers = #tpu.dot_dimension_numbers<[1], [0], [0], [1], [0, 0, 1, 1], [], []>} : vector<32x32xf32>, vector<32x256xf32>, vector<32x256xf32> -> vector<32x256xf32>
    %10 = vector.broadcast %8 : vector<32x1xf32> to vector<32x256xf32>
    %11 = arith.addf %9, %10 : vector<32x256xf32>
    %12 = math.tanh %11 : vector<32x256xf32>
    %c64 = arith.constant 64 : index
    %c0_8 = arith.constant 0 : index
    %13 = vector.load %arg2[%c64, %c0_8] : memref<72x128xf32, #tpu.memory_space<vmem>>, vector<1x32xf32>
    %c64_9 = arith.constant 64 : index
    %c32_10 = arith.constant 32 : index
    %14 = vector.load %arg2[%c64_9, %c32_10] : memref<72x128xf32, #tpu.memory_space<vmem>>, vector<1x1xf32>
    %cst_11 = arith.constant dense<0.000000e+00> : vector<1x256xf32>
    %15 = tpu.matmul %13, %12, %cst_11 {dimension_numbers = #tpu.dot_dimension_numbers<[1], [0], [0], [1], [0, 0, 1, 1], [], []>} : vector<1x32xf32>, vector<32x256xf32>, vector<1x256xf32> -> vector<1x256xf32>
    %16 = vector.broadcast %14 : vector<1x1xf32> to vector<1x256xf32>
    %17 = arith.addf %15, %16 : vector<1x256xf32>
    %18 = tpu.transpose %17, [1, 0] : vector<1x256xf32> -> vector<256x1xf32>
    %c0_12 = arith.constant 0 : index
    %c0_13 = arith.constant 0 : index
    %19 = vector.load %arg3[%c0_12, %c0_13] : memref<256x1xf32, #tpu.memory_space<vmem>>, vector<256x1xf32>
    tpu.vector_store %arg3[%c0_12, %c0_13], %18 {strides = array<i32>} : memref<256x1xf32, #tpu.memory_space<vmem>>, vector<256x1xf32>,
    return
  }
  func.func @transform_0(%arg0: i32) -> (i32, i32) {
    %c0_i32 = arith.constant 0 : i32
    %c0_i32_0 = arith.constant 0 : i32
    return %arg0, %c0_i32 : i32, i32
  }
  func.func @transform_1(%arg0: i32) -> (i32, i32) {
    %c0_i32 = arith.constant 0 : i32
    %c0_i32_0 = arith.constant 0 : i32
    %c0_i32_1 = arith.constant 0 : i32
    return %c0_i32, %c0_i32_0 : i32, i32
  }
  func.func @transform_2(%arg0: i32) -> (i32, i32) {
    %c0_i32 = arith.constant 0 : i32
    %c0_i32_0 = arith.constant 0 : i32
    return %arg0, %c0_i32 : i32, i32
  }
}

</mosaic_0001>

<bundles_post_ra>
// kernel: curve_pinn_forward.1
= control target key start
LH: loop header
LB: loop body
LE: loop exit
PB: predicated region body
PF: predicated region fallthrough
CT: control target
= control target key end

     0   :  { %vm67_vm0 = vcmask 15360   ;;  %v895_v7 = vmov 2   ;;  %v896_v54 = vmov 0.0   ;;  %v897_v57 = vmov 32   ;;  %s1196_s0 = inlined_call_operand.vmem [shape: f32[200,2], index: 0, kind: input, shape index: {}]   ;;  %s1197_s1 = inlined_call_operand.vmem [shape: f32[72,128], index: 1, kind: input, shape index: {}]   ;;  %s1198_s2 = inlined_call_operand.vmem [shape: f32[200,1], index: 2, kind: output, shape index: {}]  }
   0x1   :  { %v27_v0 = vld [vmem:[%s1196_s0 + $0x80] sm:$0xff]  ;;  %v28_v1 = vld [vmem:[%s1196_s0 + $0x88] sm:$0xff]  ;;  %vm924_vm1 = vmpackc.low %vm67_vm0, %vm67_vm0  ;;  %859 = vset.pattern.permute.xlu0 %v895_v7  ;;  %860 = vset.pattern.permute.xlu1 %v895_v7  ;;  %vm293_vm2 = vcmask 261120   ;;  %vm542_vm3 = vcmask 7168  }
   0x2   :  { %v11_v2 = vld [vmem:[%s1196_s0] sm:$0xff]  ;;  %v792_v3 = vpack.c.bf16 %v28_v1, %v27_v0  ;;  %v12_v5 = vld [vmem:[%s1196_s0 + $0x8] sm:$0xff]  ;;  %v29_v6 = vld [vmem:[%s1196_s0 + $0x90] sm:$0xff]  ;;  %366 = vmatprep.mubr.f32.mxu1 %v896_v54 }
   0x3   :  { %v795_v8 = vpack.c.bf16 %v12_v5, %v11_v2  ;;  %v30_v9 = vld [vmem:[%s1196_s0 + $0x98] sm:$0xff]  ;;  %v13_v11 = vld [vmem:[%s1196_s0 + $0x10] sm:$0xff]  ;;  %v31_v13 = vld [vmem:[%s1196_s0 + $0xa0] sm:$0xff] }
   0x4   :  { %794 = vmatprep.subr.msk.bf16.mxu0 %vm924_vm1, %v792_v3  ;;  %v798_v10 = vpack.c.bf16 %v30_v9, %v29_v6  ;;  %v14_v12 = vld [vmem:[%s1196_s0 + $0x18] sm:$0xff]  ;;  %v32_v14 = vld [vmem:[%s1196_s0 + $0xa8] sm:$0xff]  ;;  %v43_v17 = vld [vmem:[%s1197_s1] sm:$0xff] }
   0x5   :  { %797 = vmatpush3.bf16.xpose.msk.msra.mxu0 %vm924_vm1, %v795_v8  ;;  %v801_v15 = vpack.c.bf16 %v14_v12, %v13_v11  ;;  %v804_v16 = vpack.c.bf16 %v32_v14, %v31_v13  ;;  %784 = vmatprep.mubr.msk.f32.mxu0 %vm67_vm0, %v43_v17  ;;  %v15_v18 = vld [vmem:[%s1196_s0 + $0x20] sm:$0xff]  ;;  %v16_v19 = vld [vmem:[%s1196_s0 + $0x28] sm:$0xff]  ;;  %v45_v20 = vld [vmem:[%s1197_s1 + $0x10] sm:$0xff] }
   0x6   :  { %800 = vmatprep.subr.msk.bf16.mxu0 %vm924_vm1, %v798_v10  ;;  %49 = vperm.xlu0 %859, %v43_v17   ;;  %v33_v21 = vld [vmem:[%s1196_s0 + $0xb0] sm:$0xff]  ;;  %v34_v22 = vld [vmem:[%s1196_s0 + $0xb8] sm:$0xff]  ;;  %v807_v23 = vpack.c.bf16 %v16_v19, %v15_v18  ;;  %v44_v24 = vld [vmem:[%s1197_s1 + $0x8] sm:$0xff] }
   0x7   :  { %59 = vperm.xlu1 %860, %v45_v20   ;;  %v810_v25 = vpack.c.bf16 %v34_v22, %v33_v21  ;;  %v46_v26 = vld [vmem:[%s1197_s1 + $0x18] sm:$0xff]  ;;  %v17_v27 = vld [vmem:[%s1196_s0 + $0x30] sm:$0xff]  ;;  %v35_v29 = vld [vmem:[%s1196_s0 + $0xc0] sm:$0xff] }
   0x8   :  { %v18_v28 = vld [vmem:[%s1196_s0 + $0x38] sm:$0xff]  ;;  %v36_v30 = vld [vmem:[%s1196_s0 + $0xc8] sm:$0xff]  ;;  %v19_v33 = vld [vmem:[%s1196_s0 + $0x40] sm:$0xff] }
   0x9   :  { %v813_v31 = vpack.c.bf16 %v18_v28, %v17_v27  ;;  %v816_v32 = vpack.c.bf16 %v36_v30, %v35_v29  ;;  %v20_v34 = vld [vmem:[%s1196_s0 + $0x48] sm:$0xff]  ;;  %v37_v35 = vld [vmem:[%s1196_s0 + $0xd0] sm:$0xff]  ;;  %v38_v36 = vld [vmem:[%s1196_s0 + $0xd8] sm:$0xff] }
   0xa   :  { %54 = vperm.xlu0 %859, %v44_v24   ;;  %v819_v37 = vpack.c.bf16 %v20_v34, %v19_v33  ;;  %v822_v38 = vpack.c.bf16 %v38_v36, %v37_v35  ;;  %v21_v39 = vld [vmem:[%s1196_s0 + $0x50] sm:$0xff]  ;;  %v22_v40 = vld [vmem:[%s1196_s0 + $0x58] sm:$0xff]  ;;  %v39_v41 = vld [vmem:[%s1196_s0 + $0xe0] sm:$0xff] }
   0xb   :  { %64 = vperm.xlu1 %860, %v46_v26   ;;  %v40_v42 = vld [vmem:[%s1196_s0 + $0xe8] sm:$0xff]  ;;  %v825_v43 = vpack.c.bf16 %v22_v40, %v21_v39  ;;  %v23_v45 = vld [vmem:[%s1196_s0 + $0x60] sm:$0xff]  ;;  %v41_v47 = vld [vmem:[%s1196_s0 + $0xf0] sm:$0xff] }
   0xc   :  { %v828_v44 = vpack.c.bf16 %v40_v42, %v39_v41  ;;  %v24_v46 = vld [vmem:[%s1196_s0 + $0x68] sm:$0xff]  ;;  %v42_v48 = vld [vmem:[%s1196_s0 + $0xf8] sm:$0xff]  ;;  %v25_v51 = vld [vmem:[%s1196_s0 + $0x70] sm:$0xff] }
   0xd   :  { %803 = vmatpush3.bf16.xpose.msk.msra.mxu0 %vm924_vm1, %v801_v15  ;;  %v831_v49 = vpack.c.bf16 %v24_v46, %v23_v45  ;;  %v834_v50 = vpack.c.bf16 %v42_v48, %v41_v47  ;;  %v26_v52 = vld [vmem:[%s1196_s0 + $0x78] sm:$0xff]  ;;  %v269_v55 = vld [vmem:[%s1197_s1 + $0x20] sm:$0xff]  ;;  %v270_v56 = vld [vmem:[%s1197_s1 + $0x28] sm:$0xff] }
   0xe   :  { %806 = vmatprep.subr.msk.bf16.mxu0 %vm924_vm1, %v804_v16  ;;  %v837_v53 = vpack.c.bf16 %v26_v52, %v25_v51  ;;  %861 = vset.pattern.permute.xlu0 %v897_v57  ;;  %v271_v58 = vld [vmem:[%s1197_s1 + $0x30] sm:$0xff]  ;;  %v272_v59 = vld [vmem:[%s1197_s1 + $0x38] sm:$0xff]  ;;  %v1083_v60 = vld [vmem:[%s1197_s1 + $0x40] sm:$0x1] }
   0xf   :  { %862 = vset.pattern.permute.xlu1 %v897_v57  ;;  %275 = vperm.xlu0 %861, %v269_v55  }
  0x10   :  { %280 = vperm.xlu1 %862, %v270_v56  }
  0x13   :  { %290 = vperm.xlu0 %861, %v272_v59  }
  0x14   :  { %285 = vperm.xlu1 %862, %v271_v58  }
  0x15   :  { %809 = vmatpush3.bf16.xpose.msk.msra.mxu0 %vm924_vm1, %v807_v23 }
  0x16   :  { %812 = vmatprep.subr.msk.bf16.mxu0 %vm924_vm1, %v810_v25 }
  0x18   :  { %402 = vperm.xlu1 %862, %v1083_v60  }
  0x1d   :  { %815 = vmatpush3.bf16.xpose.msk.msra.mxu0 %vm924_vm1, %v813_v31 }
  0x1e   :  { %818 = vmatprep.subr.msk.bf16.mxu0 %vm924_vm1, %v816_v32 }
  0x25   :  { %821 = vmatpush3.bf16.xpose.msk.msra.mxu0 %vm924_vm1, %v819_v37 }
  0x26   :  { %824 = vmatprep.subr.msk.bf16.mxu0 %vm924_vm1, %v822_v38 }
  0x2d   :  { %827 = vmatpush3.bf16.xpose.msk.msra.mxu0 %vm924_vm1, %v825_v43 }
  0x2e   :  { %830 = vmatprep.subr.msk.bf16.mxu0 %vm924_vm1, %v828_v44 }
  0x35   :  { %833 = vmatpush3.bf16.xpose.msk.msra.mxu0 %vm924_vm1, %v831_v49 }
  0x36   :  { %836 = vmatprep.subr.msk.bf16.mxu0 %vm924_vm1, %v834_v50 }
  0x3d   :  { %839 = vmatpush3.bf16.xpose.msk.msra.mxu0 %vm924_vm1, %v837_v53 }
  0x44   :  { %785 = vmatmul.mubr.msk.f32.vlgmr.msra.gmra.mrb[0].mxu0 %vm67_vm0, %v43_v17 }
  0x45   :  { %786 = vmatprep.mubr.msk.f32.mxu0 %vm67_vm0, %v44_v24 }
  0x48   :  { %787 = vmatmul.mubr.msk.f32.gmra.mrb[2].mxu0 %vm67_vm0, %v44_v24 }
  0x49   :  { %788 = vmatprep.mubr.msk.f32.mxu0 %vm67_vm0, %v45_v20 }
  0x4c   :  { %789 = vmatmul.mubr.msk.f32.gmra.mrb[4].mxu0 %vm67_vm0, %v45_v20 }
  0x4d   :  { %790 = vmatprep.mubr.msk.f32.mxu0 %vm67_vm0, %v46_v26 }
  0x50   :  { %791 = vmatmul.mubr.msk.f32.gmra.mrb[6].mxu0 %vm67_vm0, %v46_v26 }
  0x85   :  { %v50_v61 = vpop.permute.xlu0 %49 }
  0x86   :  { %v60_v6 = vpop.permute.xlu1 %59 }
  0x89   :  { %v55_v2 = vpop.permute.xlu0 %54 }
  0x8a   :  { %v65_v12 = vpop.permute.xlu1 %64 }
  0x8e   :  { %v276_v29 = vpop.permute.xlu0 %275 }
  0x8f   :  { %v281_v33 = vpop.permute.xlu1 %280 }
  0x92   :  { %v291_v44 = vpop.permute.xlu0 %290 }
  0x93   :  { %v286_v39 = vpop.permute.xlu1 %285 }
 0x117   :  { %v238_v62 = vpop.f32.mrb[0].mxu0 }
 0x118   :  { %v239_v63 = vadd.f32 %v238_v62, %v50_v61  ;;  %v240_v0 = vpop.f32.mrb[1].mxu0  ;;  %v403_v62 = vpop.permute.xlu1 %402 }
 0x119   :  { %v241_v1 = vadd.f32 %v240_v0, %v50_v61 }
 0x11a   :  { %863 = vtanh.f32 %v239_v63 }
 0x11b   :  { %v244_v3 = vpop.f32.mrb[2].mxu0  ;;  %865 = vtanh.f32 %v241_v1 }
 0x11c   :  { %v245_v4 = vadd.f32 %v244_v3, %v55_v2  ;;  %v246_v5 = vpop.f32.mrb[3].mxu0 }
 0x11d   :  { %v247_v7 = vadd.f32 %v246_v5, %v55_v2 }
 0x11e   :  { %867 = vtanh.f32 %v245_v4 }
 0x11f   :  { %869 = vtanh.f32 %v247_v7  ;;  %v250_v8 = vpop.f32.mrb[4].mxu0 }
 0x120   :  { %v251_v9 = vadd.f32 %v250_v8, %v60_v6  ;;  %v252_v10 = vpop.f32.mrb[5].mxu0 }
 0x121   :  { %v253_v11 = vadd.f32 %v252_v10, %v60_v6 }
 0x122   :  { %871 = vtanh.f32 %v251_v9 }
 0x123   :  { %v256_v13 = vpop.f32.mrb[6].mxu0  ;;  %873 = vtanh.f32 %v253_v11 }
 0x124   :  { %v257_v14 = vadd.f32 %v256_v13, %v65_v12  ;;  %v258_v15 = vpop.f32.mrb[7].mxu0  ;;  %v864_v17 = vpop.eup %863 }
 0x125   :  { %v259_v16 = vadd.f32 %v258_v15, %v65_v12  ;;  %v866_v18 = vpop.eup %865 }
 0x126   :  { %875 = vtanh.f32 %v257_v14 }
 0x127   :  { %877 = vtanh.f32 %v259_v16 }
 0x128   :  { %v868_v19 = vpop.eup %867 }
 0x129   :  { %v870_v20 = vpop.eup %869  ;;  %v842_v21 = vpack.c.bf16 %v868_v19, %v864_v17 }
 0x12a   :  { %v840_v22 = vpack.c.bf16 %v870_v20, %v866_v18 }
 0x12c   :  { %841 = vmatprep.subr.bf16.mxu1 %v840_v22  ;;  %v872_v23 = vpop.eup %871 }
 0x12d   :  { %843 = vmatpush1.bf16.msra.mxu1 %v842_v21  ;;  %v874_v24 = vpop.eup %873 }
 0x130   :  { %v876_v25 = vpop.eup %875 }
 0x131   :  { %v878_v26 = vpop.eup %877  ;;  %v846_v27 = vpack.c.bf16 %v876_v25, %v872_v23 }
 0x132   :  { %v844_v28 = vpack.c.bf16 %v878_v26, %v874_v24 }
 0x134   :  { %845 = vmatprep.subr.bf16.mxu1 %v844_v28 }
 0x135   :  { %847 = vmatpush1.bf16.msra.mxu1 %v846_v27 }
 0x138   :  { %747 = vmatmul.mubr.msk.f32.vlgmr.msra.gmra.mrb[0].mxu1 %vm293_vm2, %v269_v55 }
 0x139   :  { %372 = vmatprep.mubr.f32.mxu1 %v896_v54 }
 0x13c   :  { %748 = vmatmul.mubr.msk.f32.gmra.mrb[2].mxu1 %vm293_vm2, %v270_v56 }
 0x13d   :  { %378 = vmatprep.mubr.f32.mxu1 %v896_v54 }
 0x140   :  { %749 = vmatmul.mubr.msk.f32.gmra.mrb[4].mxu1 %vm293_vm2, %v271_v58 }
 0x141   :  { %384 = vmatprep.mubr.f32.mxu1 %v896_v54 }
 0x144   :  { %750 = vmatmul.mubr.msk.f32.gmra.mrb[6].mxu1 %vm293_vm2, %v272_v59 }
 0x145   :  { %471 = vmatprep.mubr.f32.mxu1 %v896_v54 }
 0x20b   :  { %v368_v30 = vpop.f32.mrb[0].mxu1 }
 0x20c   :  { %v369_v31 = vadd.f32 %v368_v30, %v276_v29  ;;  %v370_v32 = vpop.f32.mrb[1].mxu1 }
 0x20d   :  { %v371_v34 = vadd.f32 %v370_v32, %v276_v29 }
 0x20e   :  { %879 = vtanh.f32 %v369_v31 }
 0x20f   :  { %v374_v35 = vpop.f32.mrb[2].mxu1  ;;  %881 = vtanh.f32 %v371_v34 }
 0x210   :  { %v375_v36 = vadd.f32 %v374_v35, %v281_v33  ;;  %v376_v37 = vpop.f32.mrb[3].mxu1 }
 0x211   :  { %v377_v38 = vadd.f32 %v376_v37, %v281_v33 }
 0x212   :  { %883 = vtanh.f32 %v375_v36 }
 0x213   :  { %885 = vtanh.f32 %v377_v38  ;;  %v380_v40 = vpop.f32.mrb[4].mxu1 }
 0x214   :  { %v381_v41 = vadd.f32 %v380_v40, %v286_v39  ;;  %v382_v42 = vpop.f32.mrb[5].mxu1 }
 0x215   :  { %v383_v43 = vadd.f32 %v382_v42, %v286_v39 }
 0x216   :  { %887 = vtanh.f32 %v381_v41 }
 0x217   :  { %v386_v45 = vpop.f32.mrb[6].mxu1  ;;  %889 = vtanh.f32 %v383_v43 }
 0x218   :  { %v387_v46 = vadd.f32 %v386_v45, %v291_v44  ;;  %v388_v47 = vpop.f32.mrb[7].mxu1  ;;  %v880_v49 = vpop.eup %879 }
 0x219   :  { %v389_v48 = vadd.f32 %v388_v47, %v291_v44  ;;  %v882_v50 = vpop.eup %881 }
 0x21a   :  { %891 = vtanh.f32 %v387_v46 }
 0x21b   :  { %893 = vtanh.f32 %v389_v48 }
 0x21c   :  { %v884_v51 = vpop.eup %883 }
 0x21d   :  { %v886_v52 = vpop.eup %885  ;;  %v850_v53 = vpack.c.bf16 %v884_v51, %v880_v49 }
 0x21e   :  { %v848_v54 = vpack.c.bf16 %v886_v52, %v882_v50 }
 0x220   :  { %849 = vmatprep.subr.bf16.mxu1 %v848_v54  ;;  %v888_v55 = vpop.eup %887 }
 0x221   :  { %851 = vmatpush1.bf16.msra.mxu1 %v850_v53  ;;  %v890_v56 = vpop.eup %889 }
 0x224   :  { %v892_v57 = vpop.eup %891 }
 0x225   :  { %v894_v58 = vpop.eup %893  ;;  %v854_v59 = vpack.c.bf16 %v892_v57, %v888_v55 }
 0x226   :  { %v852_v61 = vpack.c.bf16 %v894_v58, %v890_v56 }
 0x228   :  { %853 = vmatprep.subr.bf16.mxu1 %v852_v61 }
 0x229   :  { %855 = vmatpush1.bf16.msra.mxu1 %v854_v59 }
 0x22c   :  { %751 = vmatmul.mubr.msk.f32.vlgmr.msra.gmra.mrb[8].mxu1 %vm293_vm2, %v1083_v60 }
 0x2ff   :  { %v473_v63 = vpop.f32.mrb[8].mxu1 }
 0x300   :  { %v474_v0 = vadd.f32 %v473_v63, %v403_v62  ;;  %v475_v1 = vpop.f32.mrb[9].mxu1 }
 0x301   :  { %v476_v2 = vadd.f32 %v475_v1, %v403_v62 }
 0x302   :  { %478 = vxpose.xlu0.b32.start.end [1/1] (short) %v474_v0, 128 }
 0x303   :  { %510 = vxpose.xlu1.b32.start.end [1/1] (short) %v476_v2, 128 }
 0x382   :  { %v494_v3 = vpop.trf.xlu0 }
 0x383   :  { %543 = vst.msk [vmem:[#allocation2] sm:$0xff] %vm542_vm3, %v494_v3  ;;  %v526_v4 = vpop.trf.xlu1 }
 0x384   :  { %559 = vst.msk [vmem:[#allocation2 + $0x80] sm:$0xff] %vm542_vm3, %v526_v4 }
 0x386   :  { %v495_v5 = vpop.trf.xlu0 }
 0x387   :  { %544 = vst.msk [vmem:[#allocation2 + $0x8] sm:$0xff] %vm542_vm3, %v495_v5  ;;  %v527_v6 = vpop.trf.xlu1 }
 0x388   :  { %560 = vst.msk [vmem:[#allocation2 + $0x88] sm:$0xff] %vm542_vm3, %v527_v6 }
 0x38a   :  { %v652_v60 = vld [vmem:[#allocation2] sm:$0xff]  ;;  %v496_v7 = vpop.trf.xlu0 }
 0x38b   :  { %653 = vst [vmem:[%s1198_s2] sm:$0xff] %v652_v60  ;;  %v684_v8 = vld [vmem:[#allocation2 + $0x80] sm:$0xff]  ;;  %545 = vst.msk [vmem:[#allocation2 + $0x10] sm:$0xff] %vm542_vm3, %v496_v7  ;;  %v528_v9 = vpop.trf.xlu1 }
 0x38c   :  { %685 = vst [vmem:[%s1198_s2 + $0x80] sm:$0xff] %v684_v8  ;;  %561 = vst.msk [vmem:[#allocation2 + $0x90] sm:$0xff] %vm542_vm3, %v528_v9 }
 0x38e   :  { %v654_v10 = vld [vmem:[#allocation2 + $0x8] sm:$0xff]  ;;  %v497_v11 = vpop.trf.xlu0 }
 0x38f   :  { %655 = vst [vmem:[%s1198_s2 + $0x8] sm:$0xff] %v654_v10  ;;  %v686_v12 = vld [vmem:[#allocation2 + $0x88] sm:$0xff]  ;;  %546 = vst.msk [vmem:[#allocation2 + $0x18] sm:$0xff] %vm542_vm3, %v497_v11  ;;  %v529_v13 = vpop.trf.xlu1 }
 0x390   :  { %687 = vst [vmem:[%s1198_s2 + $0x88] sm:$0xff] %v686_v12  ;;  %562 = vst.msk [vmem:[#allocation2 + $0x98] sm:$0xff] %vm542_vm3, %v529_v13 }
 0x392   :  { %v656_v14 = vld [vmem:[#allocation2 + $0x10] sm:$0xff]  ;;  %v498_v15 = vpop.trf.xlu0 }
 0x393   :  { %657 = vst [vmem:[%s1198_s2 + $0x10] sm:$0xff] %v656_v14  ;;  %v688_v16 = vld [vmem:[#allocation2 + $0x90] sm:$0xff]  ;;  %547 = vst.msk [vmem:[#allocation2 + $0x20] sm:$0xff] %vm542_vm3, %v498_v15  ;;  %v530_v17 = vpop.trf.xlu1 }
 0x394   :  { %689 = vst [vmem:[%s1198_s2 + $0x90] sm:$0xff] %v688_v16  ;;  %563 = vst.msk [vmem:[#allocation2 + $0xa0] sm:$0xff] %vm542_vm3, %v530_v17 }
 0x396   :  { %v658_v18 = vld [vmem:[#allocation2 + $0x18] sm:$0xff]  ;;  %v499_v19 = vpop.trf.xlu0 }
 0x397   :  { %659 = vst [vmem:[%s1198_s2 + $0x18] sm:$0xff] %v658_v18  ;;  %v690_v20 = vld [vmem:[#allocation2 + $0x98] sm:$0xff]  ;;  %548 = vst.msk [vmem:[#allocation2 + $0x28] sm:$0xff] %vm542_vm3, %v499_v19  ;;  %v531_v21 = vpop.trf.xlu1 }
 0x398   :  { %691 = vst [vmem:[%s1198_s2 + $0x98] sm:$0xff] %v690_v20  ;;  %564 = vst.msk [vmem:[#allocation2 + $0xa8] sm:$0xff] %vm542_vm3, %v531_v21 }
 0x39a   :  { %v660_v22 = vld [vmem:[#allocation2 + $0x20] sm:$0xff]  ;;  %v500_v23 = vpop.trf.xlu0 }
 0x39b   :  { %661 = vst [vmem:[%s1198_s2 + $0x20] sm:$0xff] %v660_v22  ;;  %v692_v24 = vld [vmem:[#allocation2 + $0xa0] sm:$0xff]  ;;  %549 = vst.msk [vmem:[#allocation2 + $0x30] sm:$0xff] %vm542_vm3, %v500_v23  ;;  %v532_v25 = vpop.trf.xlu1 }
 0x39c   :  { %693 = vst [vmem:[%s1198_s2 + $0xa0] sm:$0xff] %v692_v24  ;;  %565 = vst.msk [vmem:[#allocation2 + $0xb0] sm:$0xff] %vm542_vm3, %v532_v25 }
 0x39e   :  { %v662_v26 = vld [vmem:[#allocation2 + $0x28] sm:$0xff]  ;;  %v501_v27 = vpop.trf.xlu0 }
 0x39f   :  { %663 = vst [vmem:[%s1198_s2 + $0x28] sm:$0xff] %v662_v26  ;;  %v694_v28 = vld [vmem:[#allocation2 + $0xa8] sm:$0xff]  ;;  %550 = vst.msk [vmem:[#allocation2 + $0x38] sm:$0xff] %vm542_vm3, %v501_v27  ;;  %v533_v29 = vpop.trf.xlu1 }
 0x3a0   :  { %695 = vst [vmem:[%s1198_s2 + $0xa8] sm:$0xff] %v694_v28  ;;  %566 = vst.msk [vmem:[#allocation2 + $0xb8] sm:$0xff] %vm542_vm3, %v533_v29 }
 0x3a2   :  { %v664_v30 = vld [vmem:[#allocation2 + $0x30] sm:$0xff]  ;;  %v502_v31 = vpop.trf.xlu0 }
 0x3a3   :  { %665 = vst [vmem:[%s1198_s2 + $0x30] sm:$0xff] %v664_v30  ;;  %v696_v32 = vld [vmem:[#allocation2 + $0xb0] sm:$0xff]  ;;  %551 = vst.msk [vmem:[#allocation2 + $0x40] sm:$0xff] %vm542_vm3, %v502_v31  ;;  %v534_v33 = vpop.trf.xlu1 }
 0x3a4   :  { %697 = vst [vmem:[%s1198_s2 + $0xb0] sm:$0xff] %v696_v32  ;;  %567 = vst.msk [vmem:[#allocation2 + $0xc0] sm:$0xff] %vm542_vm3, %v534_v33 }
 0x3a6   :  { %v666_v34 = vld [vmem:[#allocation2 + $0x38] sm:$0xff]  ;;  %v503_v35 = vpop.trf.xlu0 }
 0x3a7   :  { %667 = vst [vmem:[%s1198_s2 + $0x38] sm:$0xff] %v666_v34  ;;  %v698_v36 = vld [vmem:[#allocation2 + $0xb8] sm:$0xff]  ;;  %552 = vst.msk [vmem:[#allocation2 + $0x48] sm:$0xff] %vm542_vm3, %v503_v35  ;;  %v535_v37 = vpop.trf.xlu1 }
 0x3a8   :  { %699 = vst [vmem:[%s1198_s2 + $0xb8] sm:$0xff] %v698_v36 }
 0x3aa   :  { %v668_v38 = vld [vmem:[#allocation2 + $0x40] sm:$0xff]  ;;  %v504_v39 = vpop.trf.xlu0 }
 0x3ab   :  { %669 = vst [vmem:[%s1198_s2 + $0x40] sm:$0xff] %v668_v38  ;;  %v700_v40 = vld [vmem:[#allocation2 + $0xc0] sm:$0xff]  ;;  %553 = vst.msk [vmem:[#allocation2 + $0x50] sm:$0xff] %vm542_vm3, %v504_v39  ;;  %v536_v41 = vpop.trf.xlu1 }
 0x3ac   :  { %701 = vst [vmem:[%s1198_s2 + $0xc0] sm:$0xff] %v700_v40 }
 0x3ae   :  { %v670_v42 = vld [vmem:[#allocation2 + $0x48] sm:$0xff]  ;;  %v505_v43 = vpop.trf.xlu0 }
 0x3af   :  { %671 = vst [vmem:[%s1198_s2 + $0x48] sm:$0xff] %v670_v42  ;;  %554 = vst.msk [vmem:[#allocation2 + $0x58] sm:$0xff] %vm542_vm3, %v505_v43  ;;  %v537_v44 = vpop.trf.xlu1 }
 0x3b2   :  { %v672_v45 = vld [vmem:[#allocation2 + $0x50] sm:$0xff]  ;;  %v506_v46 = vpop.trf.xlu0 }
 0x3b3   :  { %673 = vst [vmem:[%s1198_s2 + $0x50] sm:$0xff] %v672_v45  ;;  %555 = vst.msk [vmem:[#allocation2 + $0x60] sm:$0xff] %vm542_vm3, %v506_v46  ;;  %v538_v47 = vpop.trf.xlu1 }
 0x3b6   :  { %v674_v48 = vld [vmem:[#allocation2 + $0x58] sm:$0xff]  ;;  %v507_v49 = vpop.trf.xlu0 }
 0x3b7   :  { %675 = vst [vmem:[%s1198_s2 + $0x58] sm:$0xff] %v674_v48  ;;  %556 = vst.msk [vmem:[#allocation2 + $0x68] sm:$0xff] %vm542_vm3, %v507_v49  ;;  %v539_v50 = vpop.trf.xlu1 }
 0x3ba   :  { %v676_v51 = vld [vmem:[#allocation2 + $0x60] sm:$0xff]  ;;  %v508_v52 = vpop.trf.xlu0 }
 0x3bb   :  { %677 = vst [vmem:[%s1198_s2 + $0x60] sm:$0xff] %v676_v51  ;;  %557 = vst.msk [vmem:[#allocation2 + $0x70] sm:$0xff] %vm542_vm3, %v508_v52  ;;  %v540_v53 = vpop.trf.xlu1 }
 0x3be   :  { %v678_v54 = vld [vmem:[#allocation2 + $0x68] sm:$0xff]  ;;  %v509_v55 = vpop.trf.xlu0 }
 0x3bf   :  { %679 = vst [vmem:[%s1198_s2 + $0x68] sm:$0xff] %v678_v54  ;;  %558 = vst.msk [vmem:[#allocation2 + $0x78] sm:$0xff] %vm542_vm3, %v509_v55  ;;  %v541_v56 = vpop.trf.xlu1 }
 0x3c2   :  { %v680_v57 = vld [vmem:[#allocation2 + $0x70] sm:$0xff] }
 0x3c3   :  { %681 = vst [vmem:[%s1198_s2 + $0x70] sm:$0xff] %v680_v57 }
 0x3c6   :  { %v682_v58 = vld [vmem:[#allocation2 + $0x78] sm:$0xff] }
 0x3c7   :  { %683 = vst [vmem:[%s1198_s2 + $0x78] sm:$0xff] %v682_v58 }

</bundles_post_ra>
